<compile_context>
chip_gen: v7x
topology: tpu7x:2x2x1
jax: 0.10.0
libtpu: 0.0.40
codegen_flags: <defaults>
</compile_context>

<pallas_src>
import math

import jax
import jax.numpy as jnp
from jax import lax
from jax.experimental import pallas as pl
from jax.experimental.pallas import tpu as pltpu


def _round_up(x, m):
    return (x + m - 1) // m * m


def _pair(v):
    return (v, v) if isinstance(v, int) else tuple(v)


def _vmem_limit_bytes():
    # v7x: 64 MiB physical per TC -> ~48 MiB; v5e/v6e: 128 MiB -> ~96 MiB.
    try:
        cap = pltpu.get_tpu_info().vmem_capacity_bytes
    except Exception:
        cap = 64 * 1024 * 1024
    return int(min(cap * 3 // 4, 100 * 1024 * 1024))


# ---------------------------------------------------------------------------
# Batched matmul kernels:  out[b] = w @ x[b]
#   w: (M, K)  = (C_out*kH*kW, C_in)      (contraction-minor, no in-kernel T)
#   x: (B, K, N) = (batch, C_in, H*W)
#   out: (B, M, N)
# ---------------------------------------------------------------------------
def _bmm_kernel_fullk(w_ref, x_ref, o_ref):
    # Whole contraction in one tile: single write, no accumulator, no gates.
    o_ref[...] = jnp.dot(w_ref[...], x_ref[...],
                         preferred_element_type=jnp.float32).astype(o_ref.dtype)


def _bmm_kernel_ktiled(w_ref, x_ref, o_ref, acc_ref):
    @pl.when(pl.program_id(3) == 0)
    def _():
        acc_ref[...] = jnp.zeros_like(acc_ref)

    acc_ref[...] += jnp.dot(w_ref[...], x_ref[...],
                            preferred_element_type=jnp.float32)

    @pl.when(pl.program_id(3) == pl.num_programs(3) - 1)
    def _():
        o_ref[...] = acc_ref[...].astype(o_ref.dtype)


def _batched_matmul(w_lhs, x_rhs, out_dtype=jnp.float32):
    M, K = w_lhs.shape
    B, Kx, N = x_rhs.shape
    assert K == Kx

    # Lane-dense tiles. Full dims are used directly when small (exempt from the
    # (8,128) rule); larger dims use aligned tiles with ragged cdiv edges so x
    # is never pad-copied along M / H*W.
    tm = M if M <= 512 else 512          # sublane axis of the output tile
    tn = N if N <= 1024 else 1024        # lane axis of the output tile (H*W)
    grid_m = pl.cdiv(M, tm)
    grid_n = pl.cdiv(N, tn)

    cost = pl.CostEstimate(
        flops=2 * B * M * N * K,
        transcendentals=0,
        bytes_accessed=4 * (M * K + B * K * N + B * M * N),
    )
    vmem_limit = _vmem_limit_bytes()

    if K <= 1024:
        # ---- single full-K tile: 3-D all-parallel grid, no accumulator ----
        Kp = _round_up(K, 8)             # only the contraction is ever padded
        if Kp != K:
            w_lhs = jnp.pad(w_lhs, ((0, 0), (0, Kp - K)))
            x_rhs = jnp.pad(x_rhs, ((0, 0), (0, Kp - K), (0, 0)))
        return pl.pallas_call(
            _bmm_kernel_fullk,
            out_shape=jax.ShapeDtypeStruct((B, M, N), out_dtype),
            grid_spec=pltpu.PrefetchScalarGridSpec(
                num_scalar_prefetch=0,
                grid=(B, grid_m, grid_n),
                in_specs=[
                    pl.BlockSpec((tm, Kp), lambda b, i, j: (i, 0)),
                    pl.BlockSpec((None, Kp, tn), lambda b, i, j: (b, 0, j)),
                ],
                out_specs=pl.BlockSpec((None, tm, tn), lambda b, i, j: (b, i, j)),
            ),
            compiler_params=pltpu.CompilerParams(
                dimension_semantics=("parallel", "parallel", "parallel"),
                vmem_limit_bytes=vmem_limit,
            ),
            cost_estimate=cost,
        )(w_lhs, x_rhs)

    # ---- very large C_in: tile the contraction with an f32 accumulator ----
    tk = 512
    Kp = _round_up(K, tk)
    if Kp != K:
        w_lhs = jnp.pad(w_lhs, ((0, 0), (0, Kp - K)))
        x_rhs = jnp.pad(x_rhs, ((0, 0), (0, Kp - K), (0, 0)))
    return pl.pallas_call(
        _bmm_kernel_ktiled,
        out_shape=jax.ShapeDtypeStruct((B, M, N), out_dtype),
        grid_spec=pltpu.PrefetchScalarGridSpec(
            num_scalar_prefetch=0,
            grid=(B, grid_m, grid_n, Kp // tk),
            in_specs=[
                pl.BlockSpec((tm, tk), lambda b, i, j, k: (i, k)),
                pl.BlockSpec((None, tk, tn), lambda b, i, j, k: (b, k, j)),
            ],
            out_specs=pl.BlockSpec((None, tm, tn), lambda b, i, j, k: (b, i, j)),
            scratch_shapes=[pltpu.VMEM((tm, tn), jnp.float32)],
        ),
        compiler_params=pltpu.CompilerParams(
            dimension_semantics=("parallel", "parallel", "parallel", "arbitrary"),
            vmem_limit_bytes=vmem_limit,
        ),
        cost_estimate=cost,
    )(w_lhs, x_rhs)


# ---------------------------------------------------------------------------
# scaled_deconv2d forward:  x (N, C_in, H, W) -> (N, C_out, H_out, W_out)
# weight: (C_in, C_out, kH, kW) (PyTorch ConvTranspose2d layout), bias: (C_out,)
# ---------------------------------------------------------------------------
def scaled_deconv2d_forward(x, weight, bias, stride=(1, 1), dilation=(1, 1)):
    sH, sW = _pair(stride)
    dH, dW = _pair(dilation)
    Nb, C_in, H, W = x.shape
    Cw, C_out, kH, kW = weight.shape
    assert Cw == C_in
    H_out = (H - 1) * sH + dH * (kH - 1) + 1
    W_out = (W - 1) * sW + dW * (kW - 1) + 1

    # (1) Channel contraction on the MXU, batched over N, spatial axis = lanes.
    #     Both the NCHW->NHWC transpose of x and the 6-D transpose of the
    #     expanded output are eliminated (pure reshapes only).
    w_lhs = jnp.transpose(weight, (1, 2, 3, 0)).reshape(C_out * kH * kW, C_in)
    x_rhs = x.reshape(Nb, C_in, H * W)
    y = _batched_matmul(w_lhs, x_rhs, out_dtype=jnp.float32)
    y6 = y.reshape(Nb, C_out, kH, kW, H, W)        # no transpose needed

    # (2) col2im as sH*sW sub-pixel phases.  Taps with the same
    #     (kh*dH mod sH, kw*dW mod sW) land on disjoint output sub-grids, so
    #     each phase is accumulated once on a buffer 1/(sH*sW) the output size
    #     (bias folded into the init) and the phases are interleaved with one
    #     reshape — instead of kH*kW full read-modify-write passes + a bias pass.
    # TODO(synk): the lane-strided overlap-add store has no clean Pallas form;
    #             the phase accumulation stays in XLA.
    Hm = pl.cdiv(H_out, sH)
    Wm = pl.cdiv(W_out, sW)
    bias_f32 = bias.astype(jnp.float32).reshape(1, C_out, 1, 1)

    phase_rows = []
    for ph in range(sH):
        row = []
        for pw in range(sW):
            buf = jnp.broadcast_to(bias_f32, (Nb, C_out, Hm, Wm))
            for kh in range(kH):
                if (kh * dH) % sH != ph:
                    continue
                oh = (kh * dH) // sH
                for kw in range(kW):
                    if (kw * dW) % sW != pw:
                        continue
                    ow = (kw * dW) // sW
                    buf = buf.at[:, :, oh:oh + H, ow:ow + W].add(y6[:, :, kh, kw])
            row.append(buf)
        phase_rows.append(row)

    # (N, C, Hm, Wm, sH, sW) -> (N, C, Hm, sH, Wm, sW) -> (N, C, Hm*sH, Wm*sW)
    stacked = jnp.stack([jnp.stack(r, axis=-1) for r in phase_rows], axis=-2)
    out = jnp.transpose(stacked, (0, 1, 2, 4, 3, 5)).reshape(
        Nb, C_out, Hm * sH, Wm * sW)
    out = out[:, :, :H_out, :W_out]
    return out.astype(x.dtype)


def init_scaled_deconv2d_params(key, in_channels, out_channels, kernel_size,
                                dtype=jnp.float32):
    """Matches scaled_deconv2d.__init__: weight ~ N(0, wscale) with
    wscale = sqrt(2)/sqrt(prod(weight.shape[:-1])); bias = ConvTranspose2d default."""
    kH, kW = _pair(kernel_size)
    w_shape = (in_channels, out_channels, kH, kW)
    fan_in = in_channels * out_channels * kH         # np.prod(shape[:-1]) as in get_scaled_weights
    wscale = math.sqrt(2.0) / math.sqrt(fan_in)
    k_w, k_b = jax.random.split(key)
    weight = wscale * jax.random.normal(k_w, w_shape, dtype=dtype)
    bound = 1.0 / math.sqrt(out_channels * kH * kW)  # PyTorch default bias init range
    bias = jax.random.uniform(k_b, (out_channels,), dtype=dtype,
                              minval=-bound, maxval=bound)
    return weight, bias


if __name__ == "__main__":
    key = jax.random.PRNGKey(0)
    k_x, k_p = jax.random.split(key)

    batch, in_channels, out_channels = 2, 4, 8
    H = W = 16
    kernel_size = (4, 4)
    stride = (2, 2)
    dilation = (1, 1)

    x = jax.random.normal(k_x, (batch, in_channels, H, W), dtype=jnp.float32)
    weight, bias = init_scaled_deconv2d_params(k_p, in_channels, out_channels, kernel_size)

    y = scaled_deconv2d_forward(x, weight, bias, stride=stride, dilation=dilation)
    jax.block_until_ready(y)

    # Reference: ConvTranspose2d == dilated conv of zero-stuffed input with flipped kernel.
    kH, kW = kernel_size
    dH, dW = dilation
    y_ref = lax.conv_general_dilated(
        x, jnp.flip(weight, axis=(2, 3)),
        window_strides=(1, 1),
        padding=((dH * (kH - 1), dH * (kH - 1)), (dW * (kW - 1), dW * (kW - 1))),
        lhs_dilation=stride,
        rhs_dilation=dilation,
        dimension_numbers=("NCHW", "IOHW", "NCHW"),
        precision=lax.Precision.HIGHEST,
    ) + bias.reshape(1, -1, 1, 1)

    H_out = (H - 1) * stride[0] + dH * (kH - 1) + 1
    W_out = (W - 1) * stride[1] + dW * (kW - 1) + 1
    assert y.shape == (batch, out_channels, H_out, W_out)
    assert jnp.allclose(y, y_ref, atol=1e-4, rtol=1e-4)

    print("KERNEL_OK")
</pallas_src>

<mosaic_0001>
module attributes {stable_mosaic.version = 11 : i64} {
  func.func @_bmm_kernel_fullk(%arg0: i32, %arg1: i32, %arg2: i32, %arg3: memref<128x8xf32, #tpu.memory_space<vmem>>, %arg4: memref<1x8x256xf32, #tpu.memory_space<vmem>>, %arg5: memref<1x128x256xf32, #tpu.memory_space<vmem>>) attributes {dimension_semantics = [#tpu.dimension_semantics<parallel>, #tpu.dimension_semantics<parallel>, #tpu.dimension_semantics<parallel>], iteration_bounds = array<i64: 2, 1, 1>, scalar_prefetch = 0 : i64, scratch_operands = 0 : i64, tpu.core_type = #tpu.core_type<tc>, window_params = [{transform_indices = @transform_0, window_bounds = array<i64: 128, 8>}, {transform_indices = @transform_1, window_bounds = array<i64: 1, 8, 256>}, {transform_indices = @transform_2, window_bounds = array<i64: 1, 128, 256>}]} {
    %c0 = arith.constant 0 : index
    %c0_0 = arith.constant 0 : index
    %0 = vector.load %arg3[%c0, %c0_0] : memref<128x8xf32, #tpu.memory_space<vmem>>, vector<128x8xf32>
    %c0_1 = arith.constant 0 : index
    %c0_2 = arith.constant 0 : index
    %c0_3 = arith.constant 0 : index
    %1 = vector.load %arg4[%c0_1, %c0_2, %c0_3] : memref<1x8x256xf32, #tpu.memory_space<vmem>>, vector<1x8x256xf32>
    %2 = vector.shape_cast %1 : vector<1x8x256xf32> to vector<8x256xf32>
    %cst = arith.constant dense<0.000000e+00> : vector<128x256xf32>
    %3 = tpu.matmul %0, %2, %cst {dimension_numbers = #tpu.dot_dimension_numbers<[1], [0], [0], [1], [0, 0, 1, 1], [], []>} : vector<128x8xf32>, vector<8x256xf32>, vector<128x256xf32> -> vector<128x256xf32>
    %c0_4 = arith.constant 0 : index
    %c0_5 = arith.constant 0 : index
    %c0_6 = arith.constant 0 : index
    %4 = vector.load %arg5[%c0_4, %c0_5, %c0_6] : memref<1x128x256xf32, #tpu.memory_space<vmem>>, vector<1x128x256xf32>
    %5 = vector.shape_cast %4 : vector<1x128x256xf32> to vector<128x256xf32>
    %6 = vector.shape_cast %3 : vector<128x256xf32> to vector<1x128x256xf32>
    tpu.vector_store %arg5[%c0_4, %c0_5, %c0_6], %6 {strides = array<i32>} : memref<1x128x256xf32, #tpu.memory_space<vmem>>, vector<1x128x256xf32>,
    return
  }
  func.func @transform_0(%arg0: i32, %arg1: i32, %arg2: i32) -> (i32, i32) {
    %c0_i32 = arith.constant 0 : i32
    %c0_i32_0 = arith.constant 0 : i32
    return %arg1, %c0_i32 : i32, i32
  }
  func.func @transform_1(%arg0: i32, %arg1: i32, %arg2: i32) -> (i32, i32, i32) {
    %c0_i32 = arith.constant 0 : i32
    %c0_i32_0 = arith.constant 0 : i32
    return %arg0, %c0_i32, %arg2 : i32, i32, i32
  }
  func.func @transform_2(%arg0: i32, %arg1: i32, %arg2: i32) -> (i32, i32, i32) {
    %c0_i32 = arith.constant 0 : i32
    return %arg0, %arg1, %arg2 : i32, i32, i32
  }
}

</mosaic_0001>

<bundles_post_ra>
// kernel: tpu_custom_call.1
= control target key start
LH: loop header
LB: loop body
LE: loop exit
PB: predicated region body
PF: predicated region fallthrough
CT: control target
= control target key end

     0   :  { %7 = vsyncpa [#allocation3], 0  ;;  %s992_s0 = inlined_call_operand.vmem [shape: f32[128,8], index: 0, kind: input, shape index: {}]   ;;  %s993_s1 = inlined_call_operand.vmem [shape: f32[2,8,256], index: 1, kind: input, shape index: {}]   ;;  %s994_s2 = inlined_call_operand.hbm [shape: f32[2,128,256], index: 2, kind: output, shape index: {}]  }
   0x1   :  { %9 = vsyncpa [#allocation3 + $0x1], 0  ;;  %s774_s9 = smov 0   ;;  %s776_s10 = smov 0  }
   0x2   :  { %s778_s11 = smov 0   ;;  %s780_s12 = smov 0  }
   0x3   :  { %s782_s13 = smov 0   ;;  %s784_s14 = smov 0  }
   0x4 LB: > { %s583_s15 = sadd.s32 4294967295, %s753_s14   ;;  %s584_s16 = sadd.s32 4294967294, %s753_s14   ;;  %s753_s14 = sphi %s784_s14, %s15_s14   ;;  %s749_s13 = sphi %s782_s13, %s1001_s13   ;;  %s745_s12 = sphi %s780_s12, %s1000_s12   ;;  %s741_s11 = sphi %s778_s11, %s999_s11   ;;  %s737_s10 = sphi %s776_s10, %s998_s10   ;;  %s733_s9 = sphi %s774_s9, %s997_s9  }
   0x5   : > { %s34_s17 = sadd.s32 1, %s749_s13  ;;  %s99_s18 = sadd.s32 1, %s741_s11 }
   0x6   : > { %p36_p0 = scmp.ge.s32.totalorder %s34_s17, 2  ;;  %p109_p1 = scmp.ne.s32.totalorder %s741_s11, %s737_s10 }
   0x7   : > { %p110_p2 = scmp.eq.s32.totalorder %s583_s15, 1  ;;  %p115_p3 = scmp.ne.s32.totalorder %s737_s10, %s733_s9 }
   0x8   : > { %s1003_s17 = smov (%p36_p0, %s34_s17), 0  ;;  %p116_p5 = scmp.eq.s32.totalorder %s584_s16, 1 }
   0x9   : > { %p814_p4 = por %p110_p2, %p109_p1  ;;  %s92_s20 = ssub.s32 %s749_s13, %s1003_s17 }
   0xa   : > { %p588_p6 = scmp.ge.s32.totalorder %s753_s14, 1  ;;  %p97_p7 = scmp.eq.s32.totalorder %s92_s20, 0 }
   0xb   : > { %p821_p8 = por %p116_p5, %p115_p3  ;;  %p156_p9 = scmp.lt.s32.totalorder %s753_s14, 3 }
   0xc   : > { %s827_s22 = scalar_select %p97_p7, %s741_s11, %s99_s18  }
   0xd   : > { %p157_p10 = pnand %p588_p6, %p156_p9 }
   0xe   : > { %p194_p11 = scmp.lt.s32.totalorder (!%p157_p10), %s745_s12, 1  ;;  %v755_v0 = vmov (!%p157_p10), 0.0   ;;  %v205_v1 = vld [vmem:[%s992_s0] sm:$0xff] (!%p157_p10)  ;;  %vm223_vm0 = vcmask (!%p157_p10), 64512   ;;  %v206_v5 = vld [vmem:[%s992_s0 + $0x8] sm:$0xff] (!%p157_p10)  ;;  %v207_v7 = vld [vmem:[%s992_s0 + $0x10] sm:$0xff] (!%p157_p10) }
   0xf   : > { %160 = sbr.rel (%p157_p10) target bundleno = 285 (0x11d), region = 28  ;;  %336 = vmatprep.mubr.f32.mxu0 (!%p157_p10), %v755_v0  ;;  %384 = vmatprep.mubr.f32.mxu1 (!%p157_p10), %v755_v0  ;;  %v213_v4 = vld [vmem:[%s992_s0 + $0x40] sm:$0xff] (!%p157_p10)  ;;  %v214_v6 = vld [vmem:[%s992_s0 + $0x48] sm:$0xff] (!%p157_p10)  ;;  %v215_v8 = vld [vmem:[%s992_s0 + $0x50] sm:$0xff] (!%p157_p10)  ;;  %s756_s5 = smov (!%p157_p10), [#allocation2]  }
  0x10   : > { %v208_v9 = vld [vmem:[%s992_s0 + $0x18] sm:$0xff] (!%p157_p10)  ;;  %v209_v11 = vld [vmem:[%s992_s0 + $0x20] sm:$0xff] (!%p157_p10)  ;;  %v210_v13 = vld [vmem:[%s992_s0 + $0x28] sm:$0xff] (!%p157_p10)  ;;  %s679_s6 = sshll.u32 (!%p157_p10), %s756_s5, 4  ;;  %s680_s6 = int_to_ptr.vmem [resolvable:$false] %s679_s6 }
  0x11   : > { %v216_v10 = vld [vmem:[%s992_s0 + $0x58] sm:$0xff] (!%p157_p10)  ;;  %v217_v12 = vld [vmem:[%s992_s0 + $0x60] sm:$0xff] (!%p157_p10)  ;;  %v218_v14 = vld [vmem:[%s992_s0 + $0x68] sm:$0xff] (!%p157_p10)  ;;  %s681_s7 = scalar_lea.vmem (!%p157_p10), %s680_s6, 8192 }
  0x12   : > { %v211_v15 = vld [vmem:[%s992_s0 + $0x30] sm:$0xff] (!%p157_p10)  ;;  %v212_v17 = vld [vmem:[%s992_s0 + $0x38] sm:$0xff] (!%p157_p10) }
  0x13   : > { %v219_v16 = vld [vmem:[%s992_s0 + $0x70] sm:$0xff] (!%p157_p10)  ;;  %v220_v18 = vld [vmem:[%s992_s0 + $0x78] sm:$0xff] (!%p157_p10) }
  0x16   : > { %s195_s23 = scalar_select %p194_p11, %s745_s12, 1 }
  0x18   : > { %s613_s24 = sshll.u32 %s195_s23, 4 }
  0x19   : > { %s201_s27 = scalar_lea.vmem %s993_s1, %s613_s24  ;;  %s184_s24 = sand.u32 1, %s737_s10  }
  0x1a   : > { %v222_v2 = vld [vmem:[%s201_s27 + $0x8] sm:$0xff]  ;;  %v221_v3 = vld [vmem:[%s201_s27] sm:$0xff]  ;;  %s589_s25 = sshll.u32 %s184_s24, 8  ;;  %s614_s27 = sshll.u32 %s745_s12, 12 }
  0x1b   : > { %272 = vmatprep.subr.mxu0 %v222_v2  ;;  %615 = vmatprep.subr.mxu1 %v222_v2  ;;  %s901_s26 = scalar_lea.vmem [#allocation2], %s589_s25  ;;  %s936_s3 = scalar_lea.hbm %s994_s2, %s614_s27 }
  0x1c   : > { %273 = vmatpush1.msra.mxu0 %v221_v3  ;;  %616 = vmatpush1.msra.mxu1 %v221_v3  ;;  %s484_s28 = sshll.u32 %s901_s26, 4  ;;  %s946_s12 = scalar_lea.sflag [#allocation3], %s184_s24  ;;  %s938_s28 = int_to_ptr.vmem [resolvable:$true] %s484_s28 }
  0x1d   : > { %592 = vmatmul.mubr.msk.f32.vlgmr.msra.gmra.mrb[0].mxu0 %vm223_vm0, %v205_v1  ;;  %600 = vmatmul.mubr.msk.f32.vlgmr.msra.gmra.mrb[0].mxu1 %vm223_vm0, %v213_v4  ;;  %s675_s4 = scalar_lea.vmem %s938_s28, 4096  ;;  %p682_p1 = scmp.lt.s32.totalorder %s938_s28, %s680_s6 }
  0x1e   : > { %342 = vmatprep.mubr.f32.mxu0 %v755_v0  ;;  %390 = vmatprep.mubr.f32.mxu1 %v755_v0  ;;  %p676_p12 = scmp.ne.s32.totalorder %s938_s28, %s675_s4  ;;  %p683_p2 = scmp.lt.s32.totalorder %s681_s7, %s675_s4 }
  0x20   : > { %p677_p13 = pnand %p676_p12, %p814_p4  ;;  %p684_p3 = por %p683_p2, %p682_p1 }
  0x21   : > { %593 = vmatmul.mubr.msk.f32.gmra.mrb[2].mxu0 %vm223_vm0, %v206_v5  ;;  %601 = vmatmul.mubr.msk.f32.gmra.mrb[2].mxu1 %vm223_vm0, %v214_v6 }
  0x22   : > { %348 = vmatprep.mubr.f32.mxu0 %v755_v0  ;;  %396 = vmatprep.mubr.f32.mxu1 %v755_v0  ;;  %p678_p0 = pneg %p677_p13 }
  0x24   : > { %p685_p5 = pnand %p684_p3, %p678_p0 }
  0x25   : > { %594 = vmatmul.mubr.msk.f32.gmra.mrb[4].mxu0 %vm223_vm0, %v207_v7  ;;  %602 = vmatmul.mubr.msk.f32.gmra.mrb[4].mxu1 %vm223_vm0, %v215_v8 }
  0x26   : > { %354 = vmatprep.mubr.f32.mxu0 %v755_v0  ;;  %402 = vmatprep.mubr.f32.mxu1 %v755_v0 }
  0x29   : > { %595 = vmatmul.mubr.msk.f32.gmra.mrb[6].mxu0 %vm223_vm0, %v208_v9  ;;  %603 = vmatmul.mubr.msk.f32.gmra.mrb[6].mxu1 %vm223_vm0, %v216_v10 }
  0x2a   : > { %360 = vmatprep.mubr.f32.mxu0 %v755_v0  ;;  %408 = vmatprep.mubr.f32.mxu1 %v755_v0 }
  0x2d   : > { %596 = vmatmul.mubr.msk.f32.gmra.mrb[8].mxu0 %vm223_vm0, %v209_v11  ;;  %604 = vmatmul.mubr.msk.f32.gmra.mrb[8].mxu1 %vm223_vm0, %v217_v12 }
  0x2e   : > { %366 = vmatprep.mubr.f32.mxu0 %v755_v0  ;;  %414 = vmatprep.mubr.f32.mxu1 %v755_v0 }
  0x31   : > { %597 = vmatmul.mubr.msk.f32.gmra.mrb[10].mxu0 %vm223_vm0, %v210_v13  ;;  %605 = vmatmul.mubr.msk.f32.gmra.mrb[10].mxu1 %vm223_vm0, %v218_v14 }
  0x32   : > { %372 = vmatprep.mubr.f32.mxu0 %v755_v0  ;;  %420 = vmatprep.mubr.f32.mxu1 %v755_v0 }
  0x35   : > { %598 = vmatmul.mubr.msk.f32.gmra.mrb[12].mxu0 %vm223_vm0, %v211_v15  ;;  %606 = vmatmul.mubr.msk.f32.gmra.mrb[12].mxu1 %vm223_vm0, %v219_v16 }
  0x36   : > { %378 = vmatprep.mubr.f32.mxu0 %v755_v0  ;;  %426 = vmatprep.mubr.f32.mxu1 %v755_v0 }
  0x39   : > { %599 = vmatmul.mubr.msk.f32.gmra.mrb[14].mxu0 %vm223_vm0, %v212_v17  ;;  %607 = vmatmul.mubr.msk.f32.gmra.mrb[14].mxu1 %vm223_vm0, %v220_v18 }
  0xf0   : > { %v338_v19 = vpop.f32.mrb[0].mxu0  ;;  %v386_v20 = vpop.f32.mrb[0].mxu1 }
  0xf1   : > { %433 = vst [vmem:[%s901_s26] sm:$0xff] %v338_v19  ;;  %449 = vst [vmem:[%s901_s26 + $0x80] sm:$0xff] %v386_v20  ;;  %v340_v21 = vpop.f32.mrb[1].mxu0  ;;  %v388_v22 = vpop.f32.mrb[1].mxu1 }
  0xf2   : > { %434 = vst [vmem:[%s901_s26 + $0x8] sm:$0xff] %v340_v21  ;;  %450 = vst [vmem:[%s901_s26 + $0x88] sm:$0xff] %v388_v22 }
  0xf4   : > { %v344_v23 = vpop.f32.mrb[2].mxu0  ;;  %v392_v24 = vpop.f32.mrb[2].mxu1 }
  0xf5   : > { %435 = vst [vmem:[%s901_s26 + $0x10] sm:$0xff] %v344_v23  ;;  %451 = vst [vmem:[%s901_s26 + $0x90] sm:$0xff] %v392_v24  ;;  %v346_v25 = vpop.f32.mrb[3].mxu0  ;;  %v394_v26 = vpop.f32.mrb[3].mxu1 }
  0xf6   : > { %436 = vst [vmem:[%s901_s26 + $0x18] sm:$0xff] %v346_v25  ;;  %452 = vst [vmem:[%s901_s26 + $0x98] sm:$0xff] %v394_v26 }
  0xf8   : > { %v350_v27 = vpop.f32.mrb[4].mxu0  ;;  %v398_v28 = vpop.f32.mrb[4].mxu1 }
  0xf9   : > { %437 = vst [vmem:[%s901_s26 + $0x20] sm:$0xff] %v350_v27  ;;  %453 = vst [vmem:[%s901_s26 + $0xa0] sm:$0xff] %v398_v28  ;;  %v352_v29 = vpop.f32.mrb[5].mxu0  ;;  %v400_v30 = vpop.f32.mrb[5].mxu1 }
  0xfa   : > { %438 = vst [vmem:[%s901_s26 + $0x28] sm:$0xff] %v352_v29  ;;  %454 = vst [vmem:[%s901_s26 + $0xa8] sm:$0xff] %v400_v30 }
  0xfc   : > { %v356_v31 = vpop.f32.mrb[6].mxu0  ;;  %v404_v32 = vpop.f32.mrb[6].mxu1 }
  0xfd   : > { %439 = vst [vmem:[%s901_s26 + $0x30] sm:$0xff] %v356_v31  ;;  %455 = vst [vmem:[%s901_s26 + $0xb0] sm:$0xff] %v404_v32  ;;  %v358_v33 = vpop.f32.mrb[7].mxu0  ;;  %v406_v34 = vpop.f32.mrb[7].mxu1 }
  0xfe   : > { %440 = vst [vmem:[%s901_s26 + $0x38] sm:$0xff] %v358_v33  ;;  %456 = vst [vmem:[%s901_s26 + $0xb8] sm:$0xff] %v406_v34 }
 0x100   : > { %v362_v35 = vpop.f32.mrb[8].mxu0  ;;  %v410_v36 = vpop.f32.mrb[8].mxu1 }
 0x101   : > { %441 = vst [vmem:[%s901_s26 + $0x40] sm:$0xff] %v362_v35  ;;  %457 = vst [vmem:[%s901_s26 + $0xc0] sm:$0xff] %v410_v36  ;;  %v364_v37 = vpop.f32.mrb[9].mxu0  ;;  %v412_v38 = vpop.f32.mrb[9].mxu1 }
 0x102   : > { %442 = vst [vmem:[%s901_s26 + $0x48] sm:$0xff] %v364_v37  ;;  %458 = vst [vmem:[%s901_s26 + $0xc8] sm:$0xff] %v412_v38 }
 0x104   : > { %v368_v39 = vpop.f32.mrb[10].mxu0  ;;  %v416_v40 = vpop.f32.mrb[10].mxu1 }
 0x105   : > { %443 = vst [vmem:[%s901_s26 + $0x50] sm:$0xff] %v368_v39  ;;  %459 = vst [vmem:[%s901_s26 + $0xd0] sm:$0xff] %v416_v40  ;;  %v370_v41 = vpop.f32.mrb[11].mxu0  ;;  %v418_v42 = vpop.f32.mrb[11].mxu1 }
 0x106   : > { %444 = vst [vmem:[%s901_s26 + $0x58] sm:$0xff] %v370_v41  ;;  %460 = vst [vmem:[%s901_s26 + $0xd8] sm:$0xff] %v418_v42 }
 0x108   : > { %v374_v43 = vpop.f32.mrb[12].mxu0  ;;  %v422_v44 = vpop.f32.mrb[12].mxu1 }
 0x109   : > { %445 = vst [vmem:[%s901_s26 + $0x60] sm:$0xff] %v374_v43  ;;  %461 = vst [vmem:[%s901_s26 + $0xe0] sm:$0xff] %v422_v44  ;;  %v376_v45 = vpop.f32.mrb[13].mxu0  ;;  %v424_v46 = vpop.f32.mrb[13].mxu1 }
 0x10a   : > { %446 = vst [vmem:[%s901_s26 + $0x68] sm:$0xff] %v376_v45  ;;  %462 = vst [vmem:[%s901_s26 + $0xe8] sm:$0xff] %v424_v46 }
 0x10c   : > { %v380_v47 = vpop.f32.mrb[14].mxu0  ;;  %v428_v48 = vpop.f32.mrb[14].mxu1 }
 0x10d   : > { %447 = vst [vmem:[%s901_s26 + $0x70] sm:$0xff] %v380_v47  ;;  %463 = vst [vmem:[%s901_s26 + $0xf0] sm:$0xff] %v428_v48  ;;  %v382_v49 = vpop.f32.mrb[15].mxu0  ;;  %v430_v50 = vpop.f32.mrb[15].mxu1 }
 0x10e   : > { %448 = vst [vmem:[%s901_s26 + $0x78] sm:$0xff] %v382_v49  ;;  %464 = vst [vmem:[%s901_s26 + $0xf8] sm:$0xff] %v430_v50 }
 0x10f   : > { %688 = shalt.err (!%p685_p5)
}
 0x110   : > { %s689_s8 = scalar_lea.hbm %s936_s3, 4096  ;;  %s693_s18 = scalar_lea.hbm %s994_s2, 8192 }
 0x111   : > { %p690_p6 = scmp.ne.s32.totalorder %s936_s3, %s689_s8  ;;  %p694_p10 = scmp.lt.u32.totalorder %s936_s3, %s994_s2 }
 0x112   : > { %p695_p11 = scmp.lt.u32.totalorder %s693_s18, %s689_s8  ;;  %p697_p13 = scmp.lt.u32.totalorder %s689_s8, %s936_s3 }
 0x113   : > { %p691_p7 = pnand %p690_p6, %p814_p4 }
 0x114   : > { %p696_p12 = por %p695_p11, %p694_p10 }
 0x115   : > { %p692_p9 = pneg %p691_p7 }
 0x116   : > { %p698_p0 = por %p697_p13, %p696_p12 }
 0x118   : > { %p699_p1 = pnand %p698_p0, %p692_p9 }
 0x11a   : > { %702 = shalt.err (!%p699_p1)
}
 0x11b   : > { %s757_s24 = smov 256   ;;  %s758_s25 = smov 16  }
 0x11c   : > { %617 = dma.vmem_to_hbm [thread:$0]  (%p814_p4), %s938_s28, 4096, %s936_s3, %s946_s12, %s757_s24, %s757_s24, %s758_s25  }
 0x11d PF: > { %p623_p2 = scmp.ge.s32.totalorder %s753_s14, 2  ;;  %s499_s26 = sand.u32 1, %s733_s9  }
 0x11e   : > { %s500_s27 = scalar_lea.sflag [#allocation3], %s499_s26 }
 0x11f   : > { %p620_p3 = pnand %p623_p2, %p821_p8 }
 0x121   : > { %728 = dma.done.wait (!%p620_p3), %s500_s27, 4096  }
 0x122   : > { %730 = vsyncadd (!%p620_p3), %s500_s27, 4294963200  ;;  %s15_s14 = sadd.s32 1, %s753_s14   ;;  %s997_s9 = smov %s737_s10 }
 0x123   : > { %p12_p5 = scmp.ge.s32.totalorder %s15_s14, 4   ;;  %s998_s10 = smov %s741_s11 }
 0x124   : > { %s999_s11 = smov %s827_s22  ;;  %s1000_s12 = smov %s749_s13 }
 0x125   : > { %s1001_s13 = smov %s1003_s17  ;;  %14 = sbr.rel (!%p12_p5) target bundleno = 4 (0x4), region = 66 }
 0x12c   :  { %505 = vsyncpa [#allocation3], 1 }
 0x12d   :  { %507 = vsyncpa [#allocation3 + $0x1], 1 }

</bundles_post_ra>
